<compile_context>
chip_gen: v7x
topology: tpu7x:2x2x1
jax: 0.10.0
libtpu: 0.0.40
codegen_flags: <defaults>
</compile_context>

<pallas_src>
import functools

import jax
import jax.numpy as jnp
from jax import lax
from jax.experimental import pallas as pl
from jax.experimental.pallas import tpu as pltpu


def linear_policy_kernel(x_ref, wt_ref, u_ref, probs_ref, action_ref, *, output_dim):
    # ---- logits over the lane-padded action axis: (RB, K) @ (K, 128) ----
    logits = jnp.dot(x_ref[...], wt_ref[...], preferred_element_type=jnp.float32)

    col = lax.broadcasted_iota(jnp.int32, logits.shape, 1)
    valid = col < output_dim                      # mask padded action lanes
    logits = jnp.where(valid, logits, -1e30)

    # ---- softmax over the action dim (torch softmax(dim=0) on 1-D logits) ----
    m = jnp.max(logits, axis=-1, keepdims=True)
    e = jnp.exp(logits - m)                       # padded lanes -> 0
    denom = jnp.sum(e, axis=-1, keepdims=True)
    probs_ref[...] = e / denom                    # exact: probs sum to 1

    # ---- Categorical sample via the exponential race:
    #        argmin_i  Exp(1)_i / p_i  ~  Categorical(p),  with e ∝ p.
    #      One log per element; tie-break to lowest index (measure-zero). ----
    g = -jnp.log(u_ref[...])                      # Exp(1) draws, u in (0, 1)
    score = jnp.where(valid, g / e, jnp.inf)
    best = jnp.min(score, axis=-1, keepdims=True)
    cand = jnp.where(score <= best, col, 2147483647)
    act_col = jnp.min(cand, axis=-1, keepdims=True)   # (RB, 1) winning index

    # Lane-dense action store: (RB, 1) -> (1, RB) row (single XLU transpose),
    # written as one unmasked vst instead of a 1-lane strided write-back.
    action_ref[...] = act_col.T[None]                 # (1, 1, RB)


def prepare_policy_weights(w):
    """Hoisted once per optimizer update: W^T, zero-padded to 128 lanes."""
    w = jnp.asarray(w, jnp.float32)
    output_dim, input_dim = w.shape
    o_pad = pl.cdiv(output_dim, 128) * 128
    wt = jnp.zeros((input_dim, o_pad), jnp.float32).at[:, :output_dim].set(w.T)
    return wt, output_dim


def _pick_row_block(batch):
    # Big blocks amortize ~0.35 us/grid-step overhead; aim for >=2 grid steps
    # once the batch is large enough so v7x's two TensorCores split the batch.
    half = pl.cdiv(batch, 2)
    rb = ((half + 7) // 8) * 8          # sublane-aligned
    return max(8, min(2048, rb))


@functools.partial(jax.jit, static_argnames=("output_dim", "row_block"))
def _policy_step(wt, states, key, *, output_dim, row_block):
    input_dim, o_pad = wt.shape
    batch = states.shape[0]
    b_pad = pl.cdiv(batch, row_block) * row_block
    if b_pad != batch:
        states = jnp.pad(states, ((0, b_pad - batch), (0, 0)))
    num_blocks = b_pad // row_block

    # Host-side uniforms in (0, 1); minval keeps log() finite.
    # TODO(synk): replace with in-kernel pltpu.prng_* on real hardware.
    u = jax.random.uniform(key, (b_pad, o_pad), jnp.float32,
                           minval=1e-12, maxval=1.0)

    kernel = functools.partial(linear_policy_kernel, output_dim=output_dim)

    probs_pad, actions3d = pl.pallas_call(
        kernel,
        out_shape=(
            jax.ShapeDtypeStruct((b_pad, o_pad), jnp.float32),        # softmax probs
            jax.ShapeDtypeStruct((num_blocks, 1, row_block), jnp.int32),  # actions (lane-dense)
        ),
        grid=(num_blocks,),
        in_specs=[
            pl.BlockSpec((row_block, input_dim), lambda i: (i, 0)),   # states
            pl.BlockSpec((input_dim, o_pad), lambda i: (0, 0)),       # W^T (resident)
            pl.BlockSpec((row_block, o_pad), lambda i: (i, 0)),       # uniforms
        ],
        out_specs=(
            pl.BlockSpec((row_block, o_pad), lambda i: (i, 0)),
            pl.BlockSpec((1, 1, row_block), lambda i: (i, 0, 0)),
        ),
        compiler_params=pltpu.CompilerParams(
            dimension_semantics=("parallel",)),   # 2 TCs split the batch on v7x
    )(states, wt, u)

    # Trailing slices fuse under jit (no extra eager HBM pass).
    probs = probs_pad[:batch, :output_dim]
    acts = actions3d.reshape(b_pad)[:batch]
    return acts, probs


def apply_policy(wt, output_dim, states, key, *, row_block=None):
    """Batched policy step with pre-prepared weights."""
    states = jnp.asarray(states, jnp.float32)
    squeeze = states.ndim == 1
    if squeeze:
        states = states[None, :]
    if row_block is None:
        row_block = _pick_row_block(states.shape[0])
    acts, probs = _policy_step(wt, states, key,
                               output_dim=output_dim, row_block=row_block)
    if squeeze:
        return acts[0], probs[0]
    return acts, probs


def linear_policy_forward(w, states, key, *, row_block=None):
    """Convenience wrapper: prepare weights + one policy step.

    w:      (output_dim, input_dim) float32 (torch layout)
    states: (B, input_dim) or (input_dim,) float32
    Returns (actions, probs): ((B,), (B, output_dim)) or scalars for 1-D input.
    """
    wt, output_dim = prepare_policy_weights(w)
    return apply_policy(wt, output_dim, states, key, row_block=row_block)


if __name__ == "__main__":
    input_dim, output_dim, batch = 32, 8, 8

    key = jax.random.PRNGKey(0)
    k_w, k_x, k_s1, k_s2, k_s3 = jax.random.split(key, 5)
    # NOTE: torch init is zeros (uniform policy); random weights here so the
    # matvec/softmax/sampling paths are actually exercised.
    w = jax.random.normal(k_w, (output_dim, input_dim), dtype=jnp.float32) * 0.1
    states = jax.random.normal(k_x, (batch, input_dim), dtype=jnp.float32)

    # Hoisted-weights path (the per-step production path).
    wt, out_dim = prepare_policy_weights(w)
    actions, probs = apply_policy(wt, out_dim, states, k_s1)
    actions = jax.block_until_ready(actions)
    probs = jax.block_until_ready(probs)

    # ---- reference softmax head (pure JAX) ----
    ref_probs = jax.nn.softmax(states @ w.T, axis=-1)
    assert probs.shape == (batch, output_dim)
    assert actions.shape == (batch,)
    assert jnp.allclose(probs, ref_probs, rtol=1e-3, atol=1e-6), "softmax mismatch"
    assert bool(jnp.all((actions >= 0) & (actions < output_dim))), "action out of range"

    # Larger, non-multiple batch: exercises padding + multi-block grid +
    # lane-dense action reshape across blocks.
    states_big = jax.random.normal(k_s2, (200, input_dim), dtype=jnp.float32)
    a_big, p_big = apply_policy(wt, out_dim, states_big, k_s3)
    a_big = jax.block_until_ready(a_big)
    ref_big = jax.nn.softmax(states_big @ w.T, axis=-1)
    assert p_big.shape == (200, output_dim) and a_big.shape == (200,)
    assert jnp.allclose(p_big, ref_big, rtol=1e-3, atol=1e-6), "softmax mismatch (big)"
    assert bool(jnp.all((a_big >= 0) & (a_big < output_dim))), "action out of range (big)"

    # Single-state path matching the original module's forward signature.
    a1, p1 = linear_policy_forward(w, states[0], jax.random.PRNGKey(7))
    a1 = jax.block_until_ready(a1)
    assert p1.shape == (output_dim,)
    assert 0 <= int(a1) < output_dim

    print("KERNEL_OK")
</pallas_src>

<mosaic_0001>
module attributes {stable_mosaic.version = 11 : i64} {
  func.func @linear_policy_kernel(%arg0: i32, %arg1: memref<8x32xf32, #tpu.memory_space<vmem>>, %arg2: memref<32x128xf32, #tpu.memory_space<vmem>>, %arg3: memref<8x128xf32, #tpu.memory_space<vmem>>, %arg4: memref<8x128xf32, #tpu.memory_space<vmem>>, %arg5: memref<1x1x8xi32, #tpu.memory_space<vmem>>) attributes {dimension_semantics = [#tpu.dimension_semantics<parallel>], iteration_bounds = array<i64: 1>, scalar_prefetch = 0 : i64, scratch_operands = 0 : i64, tpu.core_type = #tpu.core_type<tc>, window_params = [{transform_indices = @transform_0, window_bounds = array<i64: 8, 32>}, {pipeline_mode = #tpu.pipeline_mode<synchronous>, transform_indices = @transform_1, window_bounds = array<i64: 32, 128>}, {transform_indices = @transform_2, window_bounds = array<i64: 8, 128>}, {transform_indices = @transform_3, window_bounds = array<i64: 8, 128>}, {transform_indices = @transform_4, window_bounds = array<i64: 1, 1, 8>}]} {
    %c0 = arith.constant 0 : index
    %c0_0 = arith.constant 0 : index
    %0 = vector.load %arg1[%c0, %c0_0] : memref<8x32xf32, #tpu.memory_space<vmem>>, vector<8x32xf32>
    %c0_1 = arith.constant 0 : index
    %c0_2 = arith.constant 0 : index
    %1 = vector.load %arg2[%c0_1, %c0_2] : memref<32x128xf32, #tpu.memory_space<vmem>>, vector<32x128xf32>
    %cst = arith.constant dense<0.000000e+00> : vector<8x128xf32>
    %2 = tpu.matmul %0, %1, %cst {dimension_numbers = #tpu.dot_dimension_numbers<[1], [0], [0], [1], [0, 0, 1, 1], [], []>} : vector<8x32xf32>, vector<32x128xf32>, vector<8x128xf32> -> vector<8x128xf32>
    %3 = tpu.iota {dimensions = array<i32: 1>} : vector<8x128xi32>
    %c8_i32 = arith.constant 8 : i32
    %4 = vector.broadcast %c8_i32 : i32 to vector<8x128xi32>
    %5 = arith.cmpi slt, %3, %4 : vector<8x128xi32>
    %cst_3 = arith.constant -1.000000e+30 : f32
    %6 = vector.broadcast %cst_3 : f32 to vector<8x128xf32>
    %7 = arith.select %5, %2, %6 : vector<8x128xi1>, vector<8x128xf32>
    %cst_4 = arith.constant dense<0xFF800000> : vector<8xf32>
    %8 = vector.multi_reduction <maximumf>, %7, %cst_4 [1] : vector<8x128xf32> to vector<8xf32>
    %9 = vector.shape_cast %8 : vector<8xf32> to vector<8x1xf32>
    %10 = vector.broadcast %9 : vector<8x1xf32> to vector<8x128xf32>
    %11 = arith.subf %7, %10 : vector<8x128xf32>
    %12 = math.exp %11 : vector<8x128xf32>
    %cst_5 = arith.constant dense<0.000000e+00> : vector<8xf32>
    %13 = vector.multi_reduction <add>, %12, %cst_5 [1] : vector<8x128xf32> to vector<8xf32>
    %14 = vector.shape_cast %13 : vector<8xf32> to vector<8x1xf32>
    %15 = vector.broadcast %14 : vector<8x1xf32> to vector<8x128xf32>
    %16 = arith.divf %12, %15 : vector<8x128xf32>
    %c0_6 = arith.constant 0 : index
    %c0_7 = arith.constant 0 : index
    %17 = vector.load %arg4[%c0_6, %c0_7] : memref<8x128xf32, #tpu.memory_space<vmem>>, vector<8x128xf32>
    tpu.vector_store %arg4[%c0_6, %c0_7], %16 {strides = array<i32>} : memref<8x128xf32, #tpu.memory_space<vmem>>, vector<8x128xf32>,
    %c0_8 = arith.constant 0 : index
    %c0_9 = arith.constant 0 : index
    %18 = vector.load %arg3[%c0_8, %c0_9] : memref<8x128xf32, #tpu.memory_space<vmem>>, vector<8x128xf32>
    %19 = math.log %18 : vector<8x128xf32>
    %cst_10 = arith.constant 0.000000e+00 : f32
    %20 = vector.broadcast %cst_10 : f32 to vector<8x128xf32>
    %21 = arith.subf %20, %19 : vector<8x128xf32>
    %22 = arith.divf %21, %12 : vector<8x128xf32>
    %cst_11 = arith.constant 0x7F800000 : f32
    %23 = vector.broadcast %cst_11 : f32 to vector<8x128xf32>
    %24 = arith.select %5, %22, %23 : vector<8x128xi1>, vector<8x128xf32>
    %cst_12 = arith.constant dense<0x7F800000> : vector<8xf32>
    %25 = vector.multi_reduction <minimumf>, %24, %cst_12 [1] : vector<8x128xf32> to vector<8xf32>
    %26 = vector.shape_cast %25 : vector<8xf32> to vector<8x1xf32>
    %27 = vector.broadcast %26 : vector<8x1xf32> to vector<8x128xf32>
    %28 = arith.cmpf ole, %24, %27 : vector<8x128xf32>
    %c2147483647_i32 = arith.constant 2147483647 : i32
    %29 = vector.broadcast %c2147483647_i32 : i32 to vector<8x128xi32>
    %30 = arith.select %28, %3, %29 : vector<8x128xi1>, vector<8x128xi32>
    %cst_13 = arith.constant dense<2147483647> : vector<8xi32>
    %31 = vector.multi_reduction <minsi>, %30, %cst_13 [1] : vector<8x128xi32> to vector<8xi32>
    %32 = vector.shape_cast %31 : vector<8xi32> to vector<8x1xi32>
    %33 = tpu.transpose %32, [1, 0] : vector<8x1xi32> -> vector<1x8xi32>
    %34 = vector.shape_cast %33 : vector<1x8xi32> to vector<1x1x8xi32>
    %c0_14 = arith.constant 0 : index
    %c0_15 = arith.constant 0 : index
    %c0_16 = arith.constant 0 : index
    %35 = vector.load %arg5[%c0_14, %c0_15, %c0_16] : memref<1x1x8xi32, #tpu.memory_space<vmem>>, vector<1x1x8xi32>
    tpu.vector_store %arg5[%c0_14, %c0_15, %c0_16], %34 {strides = array<i32>} : memref<1x1x8xi32, #tpu.memory_space<vmem>>, vector<1x1x8xi32>,
    return
  }
  func.func @transform_0(%arg0: i32) -> (i32, i32) {
    %c0_i32 = arith.constant 0 : i32
    %c0_i32_0 = arith.constant 0 : i32
    return %arg0, %c0_i32 : i32, i32
  }
  func.func @transform_1(%arg0: i32) -> (i32, i32) {
    %c0_i32 = arith.constant 0 : i32
    %c0_i32_0 = arith.constant 0 : i32
    %c0_i32_1 = arith.constant 0 : i32
    return %c0_i32, %c0_i32_0 : i32, i32
  }
  func.func @transform_2(%arg0: i32) -> (i32, i32) {
    %c0_i32 = arith.constant 0 : i32
    %c0_i32_0 = arith.constant 0 : i32
    return %arg0, %c0_i32 : i32, i32
  }
  func.func @transform_3(%arg0: i32) -> (i32, i32) {
    %c0_i32 = arith.constant 0 : i32
    %c0_i32_0 = arith.constant 0 : i32
    return %arg0, %c0_i32 : i32, i32
  }
  func.func @transform_4(%arg0: i32) -> (i32, i32, i32) {
    %c0_i32 = arith.constant 0 : i32
    %c0_i32_0 = arith.constant 0 : i32
    %c0_i32_1 = arith.constant 0 : i32
    return %arg0, %c0_i32, %c0_i32_0 : i32, i32, i32
  }
}

</mosaic_0001>

<bundles_post_ra>
// kernel: _policy_step.1
= control target key start
LH: loop header
LB: loop body
LE: loop exit
PB: predicated region body
PF: predicated region fallthrough
CT: control target
= control target key end

     0   :  { %10 = vsyncpa [#allocation3], 0  ;;  %v283_v3 = vmov 0.0|0.0   ;;  %vm284_vm0 = vmmov 0   ;;  %v285_v6 = vmov 0.0   ;;  %s357_s0 = inlined_call_operand.vmem [shape: f32[8,32], index: 0, kind: input, shape index: {}]   ;;  %s358_s1 = inlined_call_operand.vmem [shape: f32[32,128], index: 1, kind: input, shape index: {}]   ;;  %s359_s2 = inlined_call_operand.vmem [shape: f32[8,128], index: 2, kind: input, shape index: {}]   ;;  %s360_s3 = inlined_call_operand.hbm [shape: f32[8,128], index: 3, kind: output, shape index: {0}]   ;;  %s361_s4 = inlined_call_operand.hbm [shape: s32[1,1,8], index: 4, kind: output, shape index: {1}]  }
   0x1   :  { %v19_v0 = vld [vmem:[%s358_s1] sm:$0xff]  ;;  %v20_v1 = vld [vmem:[%s358_s1 + $0x8] sm:$0xff]  ;;  %v21_v2 = vld [vmem:[%s358_s1 + $0x10] sm:$0xff]  ;;  %215 = vmatprep.subr.bf16.mxu0 %v283_v3  ;;  %212 = vmatprep.mubr.msk.f32.mxu0 %vm284_vm0, %v285_v6 }
   0x2   :  { %v216_v4 = vpack.c.bf16 %v20_v1, %v19_v0  ;;  %v22_v5 = vld [vmem:[%s358_s1 + $0x18] sm:$0xff] }
   0x3   :  { %11 = vsyncpa [#allocation5], 0  ;;  %v219_v7 = vpack.c.bf16 %v22_v5, %v21_v2  ;;  %v18_v8 = vld [vmem:[%s357_s0] sm:$0xff]  ;;  %vm23_vm1 = vcmask 261120   ;;  %v97_v9 = vlaneseq  ;;  %s286_s0 = smov [#allocation2]  }
   0x4   :  { %217 = vmatpush3.bf16.msra.mxu0 %v216_v4  ;;  %v111_v17 = vld [vmem:[%s359_s2] sm:$0xff]  ;;  %s176_s2 = sshll.u32 %s286_s0, 4  ;;  %s177_s2 = int_to_ptr.vmem [resolvable:$true] %s176_s2 }
   0x5   :  { %218 = vmatprep.subr.bf16.mxu0 %v283_v3  ;;  %v98_v10 = vand.u32 127, %v97_v9  ;;  %s235_s26 = scalar_lea.vmem %s177_s2, 128  ;;  %p240_p1 = scmp.lt.s32.totalorder %s177_s2, %s177_s2 }
   0x6   :  { %p236_p0 = scmp.ne.s32.totalorder %s177_s2, %s235_s26  ;;  %p241_p2 = scmp.lt.s32.totalorder %s235_s26, %s235_s26 }
   0x7   :  { %vm99_vm2 = vcmp.lt.s32.totalorder %v98_v10, 8 }
   0x8   :  { %220 = vmatpush3.bf16.msra.mxu0 %v219_v7  ;;  %p242_p3 = por %p241_p2, %p240_p1 }
   0xa   :  { %p243_p4 = pnand %p242_p3, %p236_p0 }
   0xb   :  { %213 = vmatmul.mubr.msk.f32.vlgmr.msra.gmra.mrb[0].mxu0 %vm23_vm1, %v18_v8 }
  0xde   :  { %v93_v11 = vpop.f32.mrb[0].mxu0 }
  0xdf   :  { %v214_v12 = vpop.f32.mrb[1].mxu0  ;;  %v100_v13 = vsel %vm99_vm2, %v93_v11, -1e+30 }
  0xe0   :  { %101 = vmax.xlane.f32.xlu0 %v100_v13 }
 0x16d   :  { %v102_v14 = vpop.xlane.xlu0 %101 }
 0x16e   :  { %v103_v15 = vsub.f32 %v100_v13, %v102_v14 }
 0x170   :  { %v104_v16 = vmul.f32 1.442695, %v103_v15 }
 0x172   :  { %227 = vpow2.f32 %v104_v16 }
 0x173   :  { %229 = vlog2.f32 %v111_v17 }
 0x17c   :  { %v228_v18 = vpop.eup %227 }
 0x17d   :  { %v230_v19 = vpop.eup %229  ;;  %231 = vrcp.f32 %v228_v18 }
 0x17e   :  { %v113_v20 = vmul.f32 0.6931472, %v230_v19 }
 0x180   :  { %v114_v21 = vsub.f32 0.0, %v113_v20 }
 0x187   :  { %v232_v22 = vpop.eup %231 }
 0x188   :  { %v116_v23 = vmul.f32 %v232_v22, %v114_v21 }
 0x18a   :  { %v117_v24 = vsel %vm99_vm2, %v116_v23, inf }
 0x18b   :  { %118 = vmin.xlane.f32.xlu0 %v117_v24 }
 0x18f   :  { %106 = vadd.xlane.f32.xlu0 %v228_v18 }
 0x218   :  { %v119_v25 = vpop.xlane.xlu0 %118 }
 0x219   :  { %vm120_vm3 = vcmp.le.f32.partialorder %v117_v24, %v119_v25 }
 0x21a   :  { %v121_v26 = vsel %vm120_vm3, %v98_v10, 2147483647 }
 0x21b   :  { %v123_v27 = vshra.s32 %v121_v26, 16  ;;  %v122_v32 = vand.u32 65535, %v121_v26 }
 0x21c   :  { %v107_v28 = vpop.xlane.xlu0 %106 }
 0x21d   :  { %233 = vrcp.f32 %v107_v28  ;;  %v125_v29 = vcvt.s32.f32 %v123_v27  ;;  %v124_v34 = vcvt.s32.f32 %v122_v32 }
 0x21f   :  { %126 = vmin.xlane.f32.xlu1 %v125_v29 }
 0x227   :  { %v234_v30 = vpop.eup %233 }
 0x228   :  { %v109_v31 = vmul.f32 %v234_v30, %v228_v18 }
 0x22a   :  { %110 = vst [vmem:[#allocation2] sm:$0xff] %v109_v31 }
 0x2ac   :  { %v127_v33 = vpop.xlane.xlu1 %126 }
 0x2ad   :  { %vm128_vm4 = vcmp.eq.f32.partialorder %v125_v29, %v127_v33  ;;  %v133_v36 = vcvt.f32.s32 %v127_v33 }
 0x2ae   :  { %v129_v35 = vsel %vm128_vm4, %v124_v34, inf }
 0x2af   :  { %130 = vmin.xlane.f32.xlu1 %v129_v35  ;;  %v134_v38 = vshll.u32 %v133_v36, 16 }
 0x33c   :  { %v131_v37 = vpop.xlane.xlu1 %130 }
 0x33d   :  { %v132_v39 = vcvt.f32.s32 %v131_v37 }
 0x33f   :  { %v135_v40 = vadd.s32 %v134_v38, %v132_v39 }
 0x341   :  { %136 = vxpose.xlu1.b32.start.end [1/1] (short) (narrow) %v135_v40, 8 }
 0x342   :  { %246 = shalt.err (!%p243_p4)
}
 0x343   :  { %s247_s29 = scalar_lea.hbm %s360_s3, 128 }
 0x344   :  { %p248_p5 = scmp.ne.s32.totalorder %s360_s3, %s247_s29  ;;  %p251_p6 = scmp.lt.u32.totalorder %s247_s29, %s360_s3 }
 0x346   :  { %p253_p7 = pnand %p251_p6, %p248_p5 }
 0x348   :  { %256 = shalt.err (!%p253_p7)
}
 0x349   :  { %179 = dma.vmem_to_hbm [thread:$0]  %s177_s2, 128, %s360_s3, [#allocation3]   ;;  %vm168_vm5 = vcmask 57344  }
 0x34a   :  { %s287_s10 = smov [#allocation4]  }
 0x34b   :  { %s186_s11 = sshll.u32 %s287_s10, 4  ;;  %s187_s11 = int_to_ptr.vmem [resolvable:$true] %s186_s11 }
 0x34c   :  { %s257_s12 = scalar_lea.vmem %s187_s11, 16  ;;  %s261_s13 = scalar_lea.vmem %s187_s11, 32 }
 0x34d   :  { %p258_p8 = scmp.ne.s32.totalorder %s187_s11, %s257_s12  ;;  %p262_p9 = scmp.lt.s32.totalorder %s187_s11, %s187_s11 }
 0x34e   :  { %p263_p10 = scmp.lt.s32.totalorder %s261_s13, %s257_s12 }
 0x350   :  { %p264_p11 = por %p263_p10, %p262_p9 }
 0x352   :  { %p265_p12 = pnand %p264_p11, %p258_p8 }
 0x3c1   :  { %v152_v41 = vpop.trf.xlu1 }
 0x3c2   :  { %169 = vst.msk [vmem:[#allocation4] sm:$0x1] %vm168_vm5, %v152_v41 }
 0x3c3   :  { %268 = shalt.err (!%p265_p12)
}
 0x3c4   :  { %s269_s16 = scalar_lea.hbm %s361_s4, 16 }
 0x3c5   :  { %p270_p13 = scmp.ne.s32.totalorder %s361_s4, %s269_s16  ;;  %p273_p0 = scmp.lt.u32.totalorder %s269_s16, %s361_s4 }
 0x3c7   :  { %p275_p1 = pnand %p273_p0, %p270_p13 }
 0x3c9   :  { %278 = shalt.err (!%p275_p1)
}
 0x3ca   :  { %189 = dma.vmem_to_hbm [thread:$0]  %s187_s11, 16, %s361_s4, [#allocation5]  }
 0x3cb   :  { %279 = dma.done.wait [#allocation3], 128  }
 0x3cc   :  { %280 = vsyncadd [#allocation3], 4294967168 }
 0x3cd   :  { %281 = dma.done.wait [#allocation5], 16  }
 0x3ce   :  { %282 = vsyncadd [#allocation5], 4294967280 }
 0x3cf   :  { %196 = vsyncpa [#allocation3], 1 }
 0x3d0   :  { %197 = vsyncpa [#allocation5], 1 }

</bundles_post_ra>
